<compile_context>
chip_gen: v7x
topology: tpu7x:2x2x1
jax: 0.10.0
libtpu: 0.0.40
codegen_flags: <defaults>
</compile_context>

<pallas_src>
import functools

import jax
import jax.numpy as jnp
from jax.experimental import pallas as pl
from jax.experimental.pallas import tpu as pltpu


def _round_up(x, m):
    return (x + m - 1) // m * m


def world_model_kernel(
    xa_ref, bias_ref,
    w_in_ref, w_s2_ref, w_a2_ref,
    w_d1s_ref, w_d1a_ref, w_d2_ref,
    next_state_ref, action_latent_ref,
    *, hidden_dim, pad_latent, pad_state,
):
    f32 = jnp.float32
    bf16 = jnp.bfloat16
    H = hidden_dim

    # Packed biases (f32): rows 0..3 = b_s2, b_a2, b_d1, b_d2.
    # (b_s1 / b_a1 are folded into w_in's "ones" row.)
    b_s2 = bias_ref[0:1, :H]
    b_a2 = bias_ref[1:2, :pad_latent]
    b_d1 = bias_ref[2:3, :H]
    b_d2 = bias_ref[3:4, :pad_state]

    # --- fused first layers of state & action encoders -------------------
    # xa = [state | action | 1 | 0-pad] (bf16). w_in is block-diagonal
    # (w_s1 | w_a1) with a bias row aligned to the ones column, so a single
    # MXU pass yields both (TB, H) first-layer pre-activations + biases.
    hg = jnp.dot(xa_ref[...], w_in_ref[...], preferred_element_type=f32)
    hg = jnp.maximum(hg, 0.0).astype(bf16)           # fused ReLU + downcast
    h = hg[:, :H]                                    # state branch hidden (bf16)
    g = hg[:, H:]                                    # action branch hidden (bf16)

    # --- state encoder layer 2: Linear -> ReLU ----------------------------
    s2 = jnp.dot(h, w_s2_ref[...], preferred_element_type=f32) + b_s2
    state_enc = jnp.maximum(s2, 0.0).astype(bf16)    # keep only bf16 copy live

    # --- action encoder layer 2: Linear (real output) ---------------------
    # Padded lanes of action_latent are exactly zero because BOTH w_a2's
    # padded columns and b_a2's padded lanes are zero (prepare_params invariant)
    # -> safe for the folded-concat dynamics matmul below.
    a_lat = jnp.dot(g, w_a2_ref[...], preferred_element_type=f32) + b_a2
    action_latent_ref[...] = a_lat.astype(action_latent_ref.dtype)
    a_lat_bf = a_lat.astype(bf16)

    # --- dynamics: Linear(concat) -> ReLU -> Linear ------------------------
    # concat(s, a) @ Wd1 == s @ Wd1[:H] + a @ Wd1[H:]  (w_d1a padded rows = 0)
    d = (
        jnp.dot(state_enc, w_d1s_ref[...], preferred_element_type=f32)
        + jnp.dot(a_lat_bf, w_d1a_ref[...], preferred_element_type=f32)
        + b_d1
    )
    d = jnp.maximum(d, 0.0).astype(bf16)
    ns = jnp.dot(d, w_d2_ref[...], preferred_element_type=f32) + b_d2
    next_state_ref[...] = ns.astype(next_state_ref.dtype)


def prepare_params(params):
    """One-time transform: bf16 weights, merged/block-diagonal first layer with
    folded biases, split+padded dynamics/output weights, packed bias slab."""
    bf16 = jnp.bfloat16
    state_dim, hidden = params["w_s1"].shape
    action_dim = params["w_a1"].shape[0]
    latent = params["w_a2"].shape[1]

    assert hidden % 128 == 0, "hidden_dim must be a multiple of 128 (lane-dense)"

    pad_latent = _round_up(latent, 128)
    pad_state = _round_up(state_dim, 128)
    xa_width = _round_up(state_dim + action_dim + 1, 8)   # [state|action|1|0-pad]
    ones_row = state_dim + action_dim                       # row carrying biases

    # Merged block-diagonal first-layer weight with folded biases (bf16).
    w_in = jnp.zeros((xa_width, 2 * hidden), jnp.float32)
    w_in = w_in.at[:state_dim, :hidden].set(params["w_s1"])
    w_in = w_in.at[state_dim:state_dim + action_dim, hidden:].set(params["w_a1"])
    w_in = w_in.at[ones_row, :hidden].set(params["b_s1"].reshape(-1))
    w_in = w_in.at[ones_row, hidden:].set(params["b_a1"].reshape(-1))
    w_in = w_in.astype(bf16)

    # Lane-dense padded output-side weights. NOTE: padded columns of w_a2 and
    # padded lanes of b_a2 MUST stay zero (kernel relies on it for the folded
    # concat in the dynamics layer).
    w_a2_p = jnp.zeros((hidden, pad_latent), bf16).at[:, :latent].set(
        params["w_a2"].astype(bf16))
    w_d2_p = jnp.zeros((hidden, pad_state), bf16).at[:, :state_dim].set(
        params["w_d2"].astype(bf16))

    # Split first dynamics weight into state / latent parts (latent rows padded).
    w_d1 = params["w_d1"].astype(bf16)
    w_d1s = w_d1[:hidden, :]
    w_d1a_p = jnp.zeros((pad_latent, hidden), bf16).at[:latent, :].set(
        w_d1[hidden:, :])

    # Pack remaining biases (f32) into one (8, bw) slab (single DMA).
    bw = max(hidden, pad_latent, pad_state)
    biases = jnp.zeros((8, bw), jnp.float32)
    biases = biases.at[0, :hidden].set(params["b_s2"].reshape(-1))
    biases = biases.at[1, :latent].set(params["b_a2"].reshape(-1))   # pad lanes = 0
    biases = biases.at[2, :hidden].set(params["b_d1"].reshape(-1))
    biases = biases.at[3, :state_dim].set(params["b_d2"].reshape(-1))

    return {
        "w_in": w_in, "w_s2": params["w_s2"].astype(bf16),
        "w_a2": w_a2_p, "w_d1s": w_d1s, "w_d1a": w_d1a_p, "w_d2": w_d2_p,
        "biases": biases,
        "dims": dict(state_dim=state_dim, action_dim=action_dim,
                     latent_dim=latent, hidden_dim=hidden,
                     pad_latent=pad_latent, pad_state=pad_state,
                     xa_width=xa_width),
    }


def world_model_forward(state, action, prepared, *, max_batch_tile=128,
                        out_dtype=jnp.float32):
    """state: (B, state_dim), action: (B, action_dim) -> (next_state, action_latent)."""
    dims = prepared["dims"]
    SD, AD = dims["state_dim"], dims["action_dim"]
    H, L = dims["hidden_dim"], dims["latent_dim"]
    PL, PS = dims["pad_latent"], dims["pad_state"]
    XAW = dims["xa_width"]

    B = state.shape[0]

    # Fused first-layer input [state | action | 1 | 0-pad] in bf16 (tiny copy;
    # the ones column activates the folded b_s1/b_a1 row of w_in).
    pad_cols = XAW - (SD + AD + 1)
    xa = jnp.concatenate(
        [state, action,
         jnp.ones((B, 1), state.dtype),
         jnp.zeros((B, pad_cols), state.dtype)],
        axis=-1).astype(jnp.bfloat16)

    # Batch tile: multiple of 8 sublanes; force >= 2 grid steps when possible so
    # ("parallel",) can shard across v7x's two TensorCores (extra step overhead
    # on v5e/v6e is sub-microsecond). No wrapper-side batch pad: grid = cdiv and
    # Pallas masks the partial last block (all ops are row-independent).
    B8 = _round_up(B, 8)
    TB = min(max_batch_tile, B8)
    if B8 >= 16:
        TB = min(TB, _round_up(pl.cdiv(B8, 2), 8))
    TB = max(TB, 8)
    grid = (pl.cdiv(B, TB),)

    bw = prepared["biases"].shape[1]

    kernel = functools.partial(
        world_model_kernel, hidden_dim=H, pad_latent=PL, pad_state=PS)

    def resident(shape):      # weights / biases: same block every grid step
        return pl.BlockSpec(shape, lambda i: (0, 0))

    def batched(feat):        # activations / outputs: tiled on batch
        return pl.BlockSpec((TB, feat), lambda i: (i, 0))

    rows = grid[0] * TB
    mm_elems = XAW * 2 * H + H * H + H * PL + H * H + PL * H + H * PS
    out_bytes = jnp.dtype(out_dtype).itemsize
    cost = pl.CostEstimate(
        flops=2 * rows * mm_elems,
        bytes_accessed=2 * mm_elems + 4 * 8 * bw
        + 2 * rows * XAW + out_bytes * rows * (PS + PL),
        transcendentals=0,
    )

    next_state_p, action_latent_p = pl.pallas_call(
        kernel,
        out_shape=(
            jax.ShapeDtypeStruct((B, PS), out_dtype),
            jax.ShapeDtypeStruct((B, PL), out_dtype),
        ),
        grid=grid,
        in_specs=[
            batched(XAW),              # xa
            resident((8, bw)),         # packed biases
            resident((XAW, 2 * H)),    # merged first-layer weight (+bias row)
            resident((H, H)),          # w_s2
            resident((H, PL)),         # w_a2 (padded cols)
            resident((H, H)),          # w_d1 state part
            resident((PL, H)),         # w_d1 latent part (padded rows)
            resident((H, PS)),         # w_d2 (padded cols)
        ],
        out_specs=(batched(PS), batched(PL)),
        compiler_params=pltpu.CompilerParams(
            dimension_semantics=("parallel",),
            vmem_limit_bytes=32 * 1024 * 1024,
        ),
        cost_estimate=cost,
    )(
        xa, prepared["biases"],
        prepared["w_in"], prepared["w_s2"], prepared["w_a2"],
        prepared["w_d1s"], prepared["w_d1a"], prepared["w_d2"],
    )

    return next_state_p[:, :SD], action_latent_p[:, :L]


def init_params(key, state_dim, action_dim, latent_dim=32, hidden_dim=256):
    """Deterministic parameter init (f32); weights stored as (in, out)."""
    ks = jax.random.split(key, 6)

    def lin(k, fan_in, fan_out):
        bound = 1.0 / jnp.sqrt(fan_in)
        kw, kb = jax.random.split(k)
        w = jax.random.uniform(kw, (fan_in, fan_out), jnp.float32, -bound, bound)
        b = jax.random.uniform(kb, (1, fan_out), jnp.float32, -bound, bound)
        return w, b

    w_s1, b_s1 = lin(ks[0], state_dim, hidden_dim)
    w_s2, b_s2 = lin(ks[1], hidden_dim, hidden_dim)
    w_a1, b_a1 = lin(ks[2], action_dim, hidden_dim)
    w_a2, b_a2 = lin(ks[3], hidden_dim, latent_dim)
    w_d1, b_d1 = lin(ks[4], hidden_dim + latent_dim, hidden_dim)
    w_d2, b_d2 = lin(ks[5], hidden_dim, state_dim)

    return dict(
        w_s1=w_s1, b_s1=b_s1, w_s2=w_s2, b_s2=b_s2,
        w_a1=w_a1, b_a1=b_a1, w_a2=w_a2, b_a2=b_a2,
        w_d1=w_d1, b_d1=b_d1, w_d2=w_d2, b_d2=b_d2,
    )


def reference_forward(state, action, params):
    """Pure-JAX reference of the PyTorch forward, precision-matched to the kernel
    (bf16 matmul operands, f32 accumulation; b_s1/b_a1 rounded to bf16 because
    the kernel folds them into a bf16 weight row)."""
    bf16, f32 = jnp.bfloat16, jnp.float32

    def dot(x, w):
        return jnp.dot(x.astype(bf16), w.astype(bf16), preferred_element_type=f32)

    relu = lambda x: jnp.maximum(x, 0.0)
    b_s1 = params["b_s1"].astype(bf16).astype(f32)
    b_a1 = params["b_a1"].astype(bf16).astype(f32)

    s = relu(dot(state, params["w_s1"]) + b_s1)
    s = relu(dot(s, params["w_s2"]) + params["b_s2"])
    g = relu(dot(action, params["w_a1"]) + b_a1)
    a_lat = dot(g, params["w_a2"]) + params["b_a2"]
    c = jnp.concatenate([s, a_lat], axis=-1)
    d = relu(dot(c, params["w_d1"]) + params["b_d1"])
    ns = dot(d, params["w_d2"]) + params["b_d2"]
    return ns, a_lat


if __name__ == "__main__":
    key = jax.random.PRNGKey(0)
    k_params, k_state, k_action = jax.random.split(key, 3)

    # Small shapes consistent with the module.
    B, state_dim, action_dim = 8, 16, 8
    latent_dim, hidden_dim = 32, 256

    params = init_params(k_params, state_dim, action_dim, latent_dim, hidden_dim)
    prepared = prepare_params(params)   # one-time: merge/split/pad/bf16/bias-pack

    state = jax.random.normal(k_state, (B, state_dim), jnp.float32)
    action = jax.random.normal(k_action, (B, action_dim), jnp.float32)

    next_state, action_latent = world_model_forward(state, action, prepared)
    jax.block_until_ready((next_state, action_latent))

    ref_ns, ref_lat = reference_forward(state, action, params)
    assert next_state.shape == (B, state_dim)
    assert action_latent.shape == (B, latent_dim)
    assert jnp.allclose(next_state, ref_ns, atol=1e-3, rtol=1e-3)
    assert jnp.allclose(action_latent, ref_lat, atol=1e-3, rtol=1e-3)

    # TODO(synk): update() (Adam step / MSE backward) is training-time machinery,
    # not part of the forward pass; not implemented as a kernel.

    print("KERNEL_OK")
</pallas_src>

<mosaic_0001>
module attributes {stable_mosaic.version = 11 : i64} {
  func.func @world_model_kernel(%arg0: i32, %arg1: memref<8x32xbf16, #tpu.memory_space<vmem>>, %arg2: memref<8x256xf32, #tpu.memory_space<vmem>>, %arg3: memref<32x512xbf16, #tpu.memory_space<vmem>>, %arg4: memref<256x256xbf16, #tpu.memory_space<vmem>>, %arg5: memref<256x128xbf16, #tpu.memory_space<vmem>>, %arg6: memref<256x256xbf16, #tpu.memory_space<vmem>>, %arg7: memref<128x256xbf16, #tpu.memory_space<vmem>>, %arg8: memref<256x128xbf16, #tpu.memory_space<vmem>>, %arg9: memref<8x128xf32, #tpu.memory_space<vmem>>, %arg10: memref<8x128xf32, #tpu.memory_space<vmem>>) attributes {dimension_semantics = [#tpu.dimension_semantics<parallel>], iteration_bounds = array<i64: 1>, scalar_prefetch = 0 : i64, scratch_operands = 0 : i64, tpu.core_type = #tpu.core_type<tc>, window_params = [{transform_indices = @transform_0, window_bounds = array<i64: 8, 32>}, {pipeline_mode = #tpu.pipeline_mode<synchronous>, transform_indices = @transform_1, window_bounds = array<i64: 8, 256>}, {pipeline_mode = #tpu.pipeline_mode<synchronous>, transform_indices = @transform_2, window_bounds = array<i64: 32, 512>}, {pipeline_mode = #tpu.pipeline_mode<synchronous>, transform_indices = @transform_3, window_bounds = array<i64: 256, 256>}, {pipeline_mode = #tpu.pipeline_mode<synchronous>, transform_indices = @transform_4, window_bounds = array<i64: 256, 128>}, {pipeline_mode = #tpu.pipeline_mode<synchronous>, transform_indices = @transform_5, window_bounds = array<i64: 256, 256>}, {pipeline_mode = #tpu.pipeline_mode<synchronous>, transform_indices = @transform_6, window_bounds = array<i64: 128, 256>}, {pipeline_mode = #tpu.pipeline_mode<synchronous>, transform_indices = @transform_7, window_bounds = array<i64: 256, 128>}, {transform_indices = @transform_8, window_bounds = array<i64: 8, 128>}, {transform_indices = @transform_9, window_bounds = array<i64: 8, 128>}]} {
    %c0 = arith.constant 0 : index
    %c0_0 = arith.constant 0 : index
    %0 = vector.load %arg2[%c0, %c0_0] : memref<8x256xf32, #tpu.memory_space<vmem>>, vector<1x256xf32>
    %c1 = arith.constant 1 : index
    %c0_1 = arith.constant 0 : index
    %1 = vector.load %arg2[%c1, %c0_1] : memref<8x256xf32, #tpu.memory_space<vmem>>, vector<1x128xf32>
    %c2 = arith.constant 2 : index
    %c0_2 = arith.constant 0 : index
    %2 = vector.load %arg2[%c2, %c0_2] : memref<8x256xf32, #tpu.memory_space<vmem>>, vector<1x256xf32>
    %c3 = arith.constant 3 : index
    %c0_3 = arith.constant 0 : index
    %3 = vector.load %arg2[%c3, %c0_3] : memref<8x256xf32, #tpu.memory_space<vmem>>, vector<1x128xf32>
    %c0_4 = arith.constant 0 : index
    %c0_5 = arith.constant 0 : index
    %4 = vector.load %arg1[%c0_4, %c0_5] : memref<8x32xbf16, #tpu.memory_space<vmem>>, vector<8x32xbf16>
    %c0_6 = arith.constant 0 : index
    %c0_7 = arith.constant 0 : index
    %5 = vector.load %arg3[%c0_6, %c0_7] : memref<32x512xbf16, #tpu.memory_space<vmem>>, vector<32x512xbf16>
    %cst = arith.constant dense<0.000000e+00> : vector<8x512xf32>
    %6 = tpu.matmul %4, %5, %cst {dimension_numbers = #tpu.dot_dimension_numbers<[1], [0], [0], [1], [0, 0, 1, 1], [], []>} : vector<8x32xbf16>, vector<32x512xbf16>, vector<8x512xf32> -> vector<8x512xf32>
    %cst_8 = arith.constant 0.000000e+00 : f32
    %7 = vector.broadcast %cst_8 : f32 to vector<8x512xf32>
    %8 = arith.maximumf %6, %7 : vector<8x512xf32>
    %9 = arith.truncf %8 : vector<8x512xf32> to vector<8x512xbf16>
    %10 = vector.extract_strided_slice %9 {offsets = [0, 0], sizes = [8, 256], strides = [1, 1]} : vector<8x512xbf16> to vector<8x256xbf16>
    %11 = vector.extract_strided_slice %9 {offsets = [0, 256], sizes = [8, 256], strides = [1, 1]} : vector<8x512xbf16> to vector<8x256xbf16>
    %c0_9 = arith.constant 0 : index
    %c0_10 = arith.constant 0 : index
    %12 = vector.load %arg4[%c0_9, %c0_10] : memref<256x256xbf16, #tpu.memory_space<vmem>>, vector<256x256xbf16>
    %cst_11 = arith.constant dense<0.000000e+00> : vector<8x256xf32>
    %13 = tpu.matmul %10, %12, %cst_11 {dimension_numbers = #tpu.dot_dimension_numbers<[1], [0], [0], [1], [0, 0, 1, 1], [], []>} : vector<8x256xbf16>, vector<256x256xbf16>, vector<8x256xf32> -> vector<8x256xf32>
    %14 = vector.broadcast %0 : vector<1x256xf32> to vector<8x256xf32>
    %15 = arith.addf %13, %14 : vector<8x256xf32>
    %cst_12 = arith.constant 0.000000e+00 : f32
    %16 = vector.broadcast %cst_12 : f32 to vector<8x256xf32>
    %17 = arith.maximumf %15, %16 : vector<8x256xf32>
    %18 = arith.truncf %17 : vector<8x256xf32> to vector<8x256xbf16>
    %c0_13 = arith.constant 0 : index
    %c0_14 = arith.constant 0 : index
    %19 = vector.load %arg5[%c0_13, %c0_14] : memref<256x128xbf16, #tpu.memory_space<vmem>>, vector<256x128xbf16>
    %cst_15 = arith.constant dense<0.000000e+00> : vector<8x128xf32>
    %20 = tpu.matmul %11, %19, %cst_15 {dimension_numbers = #tpu.dot_dimension_numbers<[1], [0], [0], [1], [0, 0, 1, 1], [], []>} : vector<8x256xbf16>, vector<256x128xbf16>, vector<8x128xf32> -> vector<8x128xf32>
    %21 = vector.broadcast %1 : vector<1x128xf32> to vector<8x128xf32>
    %22 = arith.addf %20, %21 : vector<8x128xf32>
    %c0_16 = arith.constant 0 : index
    %c0_17 = arith.constant 0 : index
    %23 = vector.load %arg10[%c0_16, %c0_17] : memref<8x128xf32, #tpu.memory_space<vmem>>, vector<8x128xf32>
    tpu.vector_store %arg10[%c0_16, %c0_17], %22 {strides = array<i32>} : memref<8x128xf32, #tpu.memory_space<vmem>>, vector<8x128xf32>,
    %24 = arith.truncf %22 : vector<8x128xf32> to vector<8x128xbf16>
    %c0_18 = arith.constant 0 : index
    %c0_19 = arith.constant 0 : index
    %25 = vector.load %arg6[%c0_18, %c0_19] : memref<256x256xbf16, #tpu.memory_space<vmem>>, vector<256x256xbf16>
    %cst_20 = arith.constant dense<0.000000e+00> : vector<8x256xf32>
    %26 = tpu.matmul %18, %25, %cst_20 {dimension_numbers = #tpu.dot_dimension_numbers<[1], [0], [0], [1], [0, 0, 1, 1], [], []>} : vector<8x256xbf16>, vector<256x256xbf16>, vector<8x256xf32> -> vector<8x256xf32>
    %c0_21 = arith.constant 0 : index
    %c0_22 = arith.constant 0 : index
    %27 = vector.load %arg7[%c0_21, %c0_22] : memref<128x256xbf16, #tpu.memory_space<vmem>>, vector<128x256xbf16>
    %cst_23 = arith.constant dense<0.000000e+00> : vector<8x256xf32>
    %28 = tpu.matmul %24, %27, %cst_23 {dimension_numbers = #tpu.dot_dimension_numbers<[1], [0], [0], [1], [0, 0, 1, 1], [], []>} : vector<8x128xbf16>, vector<128x256xbf16>, vector<8x256xf32> -> vector<8x256xf32>
    %29 = arith.addf %26, %28 : vector<8x256xf32>
    %30 = vector.broadcast %2 : vector<1x256xf32> to vector<8x256xf32>
    %31 = arith.addf %29, %30 : vector<8x256xf32>
    %cst_24 = arith.constant 0.000000e+00 : f32
    %32 = vector.broadcast %cst_24 : f32 to vector<8x256xf32>
    %33 = arith.maximumf %31, %32 : vector<8x256xf32>
    %34 = arith.truncf %33 : vector<8x256xf32> to vector<8x256xbf16>
    %c0_25 = arith.constant 0 : index
    %c0_26 = arith.constant 0 : index
    %35 = vector.load %arg8[%c0_25, %c0_26] : memref<256x128xbf16, #tpu.memory_space<vmem>>, vector<256x128xbf16>
    %cst_27 = arith.constant dense<0.000000e+00> : vector<8x128xf32>
    %36 = tpu.matmul %34, %35, %cst_27 {dimension_numbers = #tpu.dot_dimension_numbers<[1], [0], [0], [1], [0, 0, 1, 1], [], []>} : vector<8x256xbf16>, vector<256x128xbf16>, vector<8x128xf32> -> vector<8x128xf32>
    %37 = vector.broadcast %3 : vector<1x128xf32> to vector<8x128xf32>
    %38 = arith.addf %36, %37 : vector<8x128xf32>
    %c0_28 = arith.constant 0 : index
    %c0_29 = arith.constant 0 : index
    %39 = vector.load %arg9[%c0_28, %c0_29] : memref<8x128xf32, #tpu.memory_space<vmem>>, vector<8x128xf32>
    tpu.vector_store %arg9[%c0_28, %c0_29], %38 {strides = array<i32>} : memref<8x128xf32, #tpu.memory_space<vmem>>, vector<8x128xf32>,
    return
  }
  func.func @transform_0(%arg0: i32) -> (i32, i32) {
    %c0_i32 = arith.constant 0 : i32
    %c0_i32_0 = arith.constant 0 : i32
    return %arg0, %c0_i32 : i32, i32
  }
  func.func @transform_1(%arg0: i32) -> (i32, i32) {
    %c0_i32 = arith.constant 0 : i32
    %c0_i32_0 = arith.constant 0 : i32
    %c0_i32_1 = arith.constant 0 : i32
    return %c0_i32, %c0_i32_0 : i32, i32
  }
  func.func @transform_2(%arg0: i32) -> (i32, i32) {
    %c0_i32 = arith.constant 0 : i32
    %c0_i32_0 = arith.constant 0 : i32
    %c0_i32_1 = arith.constant 0 : i32
    return %c0_i32, %c0_i32_0 : i32, i32
  }
  func.func @transform_3(%arg0: i32) -> (i32, i32) {
    %c0_i32 = arith.constant 0 : i32
    %c0_i32_0 = arith.constant 0 : i32
    %c0_i32_1 = arith.constant 0 : i32
    return %c0_i32, %c0_i32_0 : i32, i32
  }
  func.func @transform_4(%arg0: i32) -> (i32, i32) {
    %c0_i32 = arith.constant 0 : i32
    %c0_i32_0 = arith.constant 0 : i32
    %c0_i32_1 = arith.constant 0 : i32
    return %c0_i32, %c0_i32_0 : i32, i32
  }
  func.func @transform_5(%arg0: i32) -> (i32, i32) {
    %c0_i32 = arith.constant 0 : i32
    %c0_i32_0 = arith.constant 0 : i32
    %c0_i32_1 = arith.constant 0 : i32
    return %c0_i32, %c0_i32_0 : i32, i32
  }
  func.func @transform_6(%arg0: i32) -> (i32, i32) {
    %c0_i32 = arith.constant 0 : i32
    %c0_i32_0 = arith.constant 0 : i32
    %c0_i32_1 = arith.constant 0 : i32
    return %c0_i32, %c0_i32_0 : i32, i32
  }
  func.func @transform_7(%arg0: i32) -> (i32, i32) {
    %c0_i32 = arith.constant 0 : i32
    %c0_i32_0 = arith.constant 0 : i32
    %c0_i32_1 = arith.constant 0 : i32
    return %c0_i32, %c0_i32_0 : i32, i32
  }
  func.func @transform_8(%arg0: i32) -> (i32, i32) {
    %c0_i32 = arith.constant 0 : i32
    %c0_i32_0 = arith.constant 0 : i32
    return %arg0, %c0_i32 : i32, i32
  }
  func.func @transform_9(%arg0: i32) -> (i32, i32) {
    %c0_i32 = arith.constant 0 : i32
    %c0_i32_0 = arith.constant 0 : i32
    return %arg0, %c0_i32 : i32, i32
  }
}

</mosaic_0001>

<bundles_post_ra>
// kernel: tpu_custom_call.1
= control target key start
LH: loop header
LB: loop body
LE: loop exit
PB: predicated region body
PF: predicated region fallthrough
CT: control target
= control target key end

     0   :  { %15 = vsyncpa [#allocation3], 0  ;;  %s2100_s0 = inlined_call_operand.hbm [shape: bf16[8,32], index: 0, kind: input, shape index: {}]   ;;  %s2101_s1 = inlined_call_operand.hbm [shape: f32[8,256], index: 1, kind: input, shape index: {}]   ;;  %s2102_s2 = inlined_call_operand.hbm [shape: bf16[32,512], index: 2, kind: input, shape index: {}]   ;;  %s2103_s3 = inlined_call_operand.hbm [shape: bf16[256,256], index: 3, kind: input, shape index: {}]   ;;  %s2104_s4 = inlined_call_operand.hbm [shape: bf16[256,128], index: 4, kind: input, shape index: {}]   ;;  %s2105_s5 = inlined_call_operand.hbm [shape: bf16[256,256], index: 5, kind: input, shape index: {}]   ;;  %s2106_s6 = inlined_call_operand.hbm [shape: bf16[128,256], index: 6, kind: input, shape index: {}]   ;;  %s2107_s7 = inlined_call_operand.hbm [shape: bf16[256,128], index: 7, kind: input, shape index: {}]   ;;  %s2108_s8 = inlined_call_operand.hbm [shape: f32[8,128], index: 8, kind: output, shape index: {0}]   ;;  %s2109_s9 = inlined_call_operand.hbm [shape: f32[8,128], index: 9, kind: output, shape index: {1}]  }
   0x1   :  { %16 = vsyncpa [#allocation6], 0 }
   0x2   :  { %17 = vsyncpa [#allocation9], 0 }
   0x3   :  { %18 = vsyncpa [#allocation12], 0 }
   0x4   :  { %19 = vsyncpa [#allocation15], 0 }
   0x5   :  { %20 = vsyncpa [#allocation4], 0 }
   0x6   :  { %21 = vsyncpa [#allocation18], 0  ;;  %s1875_s30 = smov [#allocation5]   ;;  %s1876_s11 = smov [#allocation8]  }
   0x7   :  { %s38_s10 = sshll.u32 %s1875_s30, 4  ;;  %s59_s12 = sshll.u32 %s1876_s11, 4  ;;  %s39_s10 = int_to_ptr.vmem [resolvable:$true] %s38_s10  ;;  %s1942_s12 = int_to_ptr.vmem [resolvable:$true] %s59_s12 }
   0x8   :  { %s1641_s15 = scalar_lea.hbm %s2101_s1, 256 }
   0x9   :  { %p1642_p0 = scmp.ne.s32.totalorder %s2101_s1, %s1641_s15  ;;  %p1645_p1 = scmp.lt.u32.totalorder %s1641_s15, %s2101_s1 }
   0xb   :  { %p1647_p2 = pnand %p1645_p1, %p1642_p0 }
   0xd   :  { %1650 = shalt.err (!%p1647_p2)
}
   0xe   :  { %s1651_s20 = scalar_lea.vmem %s39_s10, 256  ;;  %p1656_p4 = scmp.lt.s32.totalorder %s39_s10, %s39_s10 }
   0xf   :  { %p1652_p3 = scmp.ne.s32.totalorder %s39_s10, %s1651_s20  ;;  %p1657_p5 = scmp.lt.s32.totalorder %s1651_s20, %s1651_s20 }
  0x11   :  { %p1658_p6 = por %p1657_p5, %p1656_p4 }
  0x13   :  { %p1659_p7 = pnand %p1658_p6, %p1652_p3 }
  0x15   :  { %1662 = shalt.err (!%p1659_p7)
}
  0x16   :  { %41 = dma.hbm_to_vmem [thread:$0]  %s2101_s1, 256, %s39_s10, [#allocation6]  }
  0x17   :  { %s1663_s25 = scalar_lea.hbm %s2103_s3, 4096 }
  0x18   :  { %p1664_p8 = scmp.ne.s32.totalorder %s2103_s3, %s1663_s25  ;;  %p1667_p9 = scmp.lt.u32.totalorder %s1663_s25, %s2103_s3 }
  0x1a   :  { %p1669_p10 = pnand %p1667_p9, %p1664_p8 }
  0x1c   :  { %1672 = shalt.err (!%p1669_p10)
}
  0x1d   :  { %s1673_s30 = scalar_lea.vmem %s1942_s12, 4096  ;;  %p1678_p12 = scmp.lt.s32.totalorder %s1942_s12, %s1942_s12 }
  0x1e   :  { %p1674_p11 = scmp.ne.s32.totalorder %s1942_s12, %s1673_s30  ;;  %p1679_p13 = scmp.lt.s32.totalorder %s1673_s30, %s1673_s30 }
  0x20   :  { %p1680_p0 = por %p1679_p13, %p1678_p12 }
  0x22   :  { %p1681_p1 = pnand %p1680_p0, %p1674_p11 }
  0x24   :  { %1684 = shalt.err (!%p1681_p1)
}
  0x25   :  { %s1877_s1 = smov 128   ;;  %s1878_s10 = smov 8  }
  0x26   :  { %65 = dma.hbm_to_vmem [thread:$0]  %s2103_s3, 4096, %s1942_s12, [#allocation9], %s1877_s1, %s1877_s1, %s1878_s10  }
  0x27   :  { %s1879_s14 = smov [#allocation11]   ;;  %s1880_s16 = smov [#allocation2]  }
  0x28   :  { %s83_s15 = sshll.u32 %s1879_s14, 4  ;;  %s28_s17 = sshll.u32 %s1880_s16, 4  ;;  %s84_s15 = int_to_ptr.vmem [resolvable:$true] %s83_s15  ;;  %s29_s17 = int_to_ptr.vmem [resolvable:$true] %s28_s17 }
  0x29   :  { %s1685_s20 = scalar_lea.hbm %s2105_s5, 4096 }
  0x2a   :  { %p1686_p2 = scmp.ne.s32.totalorder %s2105_s5, %s1685_s20  ;;  %p1689_p3 = scmp.lt.u32.totalorder %s1685_s20, %s2105_s5 }
  0x2c   :  { %p1691_p4 = pnand %p1689_p3, %p1686_p2 }
  0x2e   :  { %1694 = shalt.err (!%p1691_p4)
}
  0x2f   :  { %s1695_s3 = scalar_lea.vmem %s84_s15, 4096  ;;  %p1700_p6 = scmp.lt.s32.totalorder %s84_s15, %s84_s15 }
  0x30   :  { %p1696_p5 = scmp.ne.s32.totalorder %s84_s15, %s1695_s3  ;;  %p1701_p7 = scmp.lt.s32.totalorder %s1695_s3, %s1695_s3 }
  0x32   :  { %p1702_p8 = por %p1701_p7, %p1700_p6 }
  0x34   :  { %p1703_p9 = pnand %p1702_p8, %p1696_p5 }
  0x36   :  { %1706 = shalt.err (!%p1703_p9)
}
  0x37   :  { %89 = dma.hbm_to_vmem [thread:$0]  %s2105_s5, 4096, %s84_s15, [#allocation12], %s1877_s1, %s1877_s1, %s1878_s10  }
  0x38   :  { %s1707_s28 = scalar_lea.hbm %s2100_s0, 64 }
  0x39   :  { %p1708_p10 = scmp.ne.s32.totalorder %s2100_s0, %s1707_s28  ;;  %p1711_p11 = scmp.lt.u32.totalorder %s1707_s28, %s2100_s0 }
  0x3b   :  { %p1713_p12 = pnand %p1711_p11, %p1708_p10 }
  0x3d   :  { %1716 = shalt.err (!%p1713_p12)
}
  0x3e   :  { %s1717_s14 = scalar_lea.vmem %s29_s17, 64  ;;  %p1722_p0 = scmp.lt.s32.totalorder %s29_s17, %s29_s17 }
  0x3f   :  { %p1718_p13 = scmp.ne.s32.totalorder %s29_s17, %s1717_s14  ;;  %p1723_p1 = scmp.lt.s32.totalorder %s1717_s14, %s1717_s14 }
  0x41   :  { %p1724_p2 = por %p1723_p1, %p1722_p0 }
  0x43   :  { %p1725_p3 = pnand %p1724_p2, %p1718_p13 }
  0x45   :  { %1728 = shalt.err (!%p1725_p3)
}
  0x46   :  { %31 = dma.hbm_to_vmem [thread:$0]  %s2100_s0, 64, %s29_s17, [#allocation3]  }
  0x47   :  { %s1881_s16 = smov [#allocation7]   ;;  %s1729_s21 = scalar_lea.hbm %s2102_s2, 1024 }
  0x48   :  { %s47_s18 = sshll.u32 %s1881_s16, 4  ;;  %p1730_p4 = scmp.ne.s32.totalorder %s2102_s2, %s1729_s21  ;;  %s48_s18 = int_to_ptr.vmem [resolvable:$true] %s47_s18 }
  0x49   :  { %p1733_p5 = scmp.lt.u32.totalorder %s1729_s21, %s2102_s2 }
  0x4b   :  { %p1735_p6 = pnand %p1733_p5, %p1730_p4 }
  0x4d   :  { %1738 = shalt.err (!%p1735_p6)
}
  0x4e   :  { %s1739_s12 = scalar_lea.vmem %s48_s18, 1024  ;;  %p1744_p8 = scmp.lt.s32.totalorder %s48_s18, %s48_s18 }
  0x4f   :  { %p1740_p7 = scmp.ne.s32.totalorder %s48_s18, %s1739_s12  ;;  %p1745_p9 = scmp.lt.s32.totalorder %s1739_s12, %s1739_s12 }
  0x51   :  { %p1746_p10 = por %p1745_p9, %p1744_p8 }
  0x53   :  { %p1747_p11 = pnand %p1746_p10, %p1740_p7 }
  0x55   :  { %1750 = shalt.err (!%p1747_p11)
}
  0x56   :  { %s1882_s0 = smov 256   ;;  %s1883_s17 = smov 16  }
  0x57   :  { %53 = dma.hbm_to_vmem [thread:$0]  %s2102_s2, 1024, %s48_s18, [#allocation6], %s1882_s0, %s1882_s0, %s1883_s17  }
  0x58   :  { %s1884_s27 = smov [#allocation10]   ;;  %s1751_s11 = scalar_lea.hbm %s2104_s4, 2048 }
  0x59   :  { %s71_s28 = sshll.u32 %s1884_s27, 4  ;;  %p1752_p12 = scmp.ne.s32.totalorder %s2104_s4, %s1751_s11  ;;  %s72_s28 = int_to_ptr.vmem [resolvable:$true] %s71_s28 }
  0x5a   :  { %p1755_p13 = scmp.lt.u32.totalorder %s1751_s11, %s2104_s4 }
  0x5c   :  { %p1757_p0 = pnand %p1755_p13, %p1752_p12 }
  0x5e   :  { %1760 = shalt.err (!%p1757_p0)
}
  0x5f   :  { %s1761_s16 = scalar_lea.vmem %s72_s28, 2048  ;;  %p1766_p2 = scmp.lt.s32.totalorder %s72_s28, %s72_s28 }
  0x60   :  { %p1762_p1 = scmp.ne.s32.totalorder %s72_s28, %s1761_s16  ;;  %p1767_p3 = scmp.lt.s32.totalorder %s1761_s16, %s1761_s16 }
  0x62   :  { %p1768_p4 = por %p1767_p3, %p1766_p2 }
  0x64   :  { %p1769_p5 = pnand %p1768_p4, %p1762_p1 }
  0x66   :  { %1772 = shalt.err (!%p1769_p5)
}
  0x67   :  { %s1885_s2 = smov 64   ;;  %s1886_s18 = smov 4  }
  0x68   :  { %77 = dma.hbm_to_vmem [thread:$0]  %s2104_s4, 2048, %s72_s28, [#allocation9], %s1885_s2, %s1885_s2, %s1886_s18  }
  0x69   :  { %s1887_s21 = smov [#allocation13]   ;;  %s1888_s23 = smov [#allocation14]  }
  0x6a   :  { %s95_s22 = sshll.u32 %s1887_s21, 4  ;;  %s107_s24 = sshll.u32 %s1888_s23, 4  ;;  %s96_s22 = int_to_ptr.vmem [resolvable:$true] %s95_s22  ;;  %s2030_s24 = int_to_ptr.vmem [resolvable:$true] %s107_s24 }
  0x6b   :  { %s1773_s0 = scalar_lea.hbm %s2106_s6, 2048 }
  0x6c   :  { %p1774_p6 = scmp.ne.s32.totalorder %s2106_s6, %s1773_s0  ;;  %p1777_p7 = scmp.lt.u32.totalorder %s1773_s0, %s2106_s6 }
  0x6e   :  { %p1779_p8 = pnand %p1777_p7, %p1774_p6 }
  0x70   :  { %1782 = shalt.err (!%p1779_p8)
}
  0x71   :  { %s1783_s4 = scalar_lea.vmem %s96_s22, 2048  ;;  %p1788_p10 = scmp.lt.s32.totalorder %s96_s22, %s96_s22 }
  0x72   :  { %p1784_p9 = scmp.ne.s32.totalorder %s96_s22, %s1783_s4  ;;  %p1789_p11 = scmp.lt.s32.totalorder %s1783_s4, %s1783_s4 }
  0x74   :  { %p1790_p12 = por %p1789_p11, %p1788_p10 }
  0x76   :  { %p1791_p13 = pnand %p1790_p12, %p1784_p9 }
  0x78   :  { %1794 = shalt.err (!%p1791_p13)
}
  0x79   :  { %101 = dma.hbm_to_vmem [thread:$0]  %s2106_s6, 2048, %s96_s22, [#allocation12], %s1877_s1, %s1877_s1, %s1878_s10  }
  0x7a   :  { %s1795_s13 = scalar_lea.hbm %s2107_s7, 2048 }
  0x7b   :  { %p1796_p0 = scmp.ne.s32.totalorder %s2107_s7, %s1795_s13  ;;  %p1799_p1 = scmp.lt.u32.totalorder %s1795_s13, %s2107_s7 }
  0x7d   :  { %p1801_p2 = pnand %p1799_p1, %p1796_p0 }
  0x7f   :  { %1804 = shalt.err (!%p1801_p2)
}
  0x80   :  { %s1805_s19 = scalar_lea.vmem %s2030_s24, 2048  ;;  %p1810_p4 = scmp.lt.s32.totalorder %s2030_s24, %s2030_s24 }
  0x81   :  { %p1806_p3 = scmp.ne.s32.totalorder %s2030_s24, %s1805_s19  ;;  %p1811_p5 = scmp.lt.s32.totalorder %s1805_s19, %s1805_s19 }
  0x83   :  { %p1812_p6 = por %p1811_p5, %p1810_p4 }
  0x85   :  { %p1813_p7 = pnand %p1812_p6, %p1806_p3 }
  0x87   :  { %1816 = shalt.err (!%p1813_p7)
}
  0x88   :  { %113 = dma.hbm_to_vmem [thread:$0]  %s2107_s7, 2048, %s2030_s24, [#allocation15], %s1885_s2, %s1885_s2, %s1886_s18  }
  0x89   :  { %1861 = dma.done.wait [#allocation3], 64  }
  0x8a   :  { %1862 = vsyncadd [#allocation3], 4294967232 }
  0x8b   :  { %1863 = dma.done.wait [#allocation6], 1280  }
  0x8c   :  { %1864 = vsyncadd [#allocation6], 4294966016 }
  0x8d   :  { %1865 = dma.done.wait [#allocation9], 6144  }
  0x8e   :  { %1866 = vsyncadd [#allocation9], 4294961152 }
  0x8f   :  { %1867 = dma.done.wait [#allocation12], 6144  }
  0x90   :  { %1868 = vsyncadd [#allocation12], 4294961152 }
  0x91   :  { %1869 = dma.done.wait [#allocation15], 2048  }
  0x92   :  { %1870 = vsyncadd [#allocation15], 4294965248  ;;  %v1889_v0 = vmov 0   ;;  %v1477_v1 = vld [vmem:[#allocation7 + $0x4] ss:$16 sps:$4 sm:$0xff]   ;;  %vm193_vm0 = vcmask 261120  }
  0x93   :  { %229 = vmatprep.mubr.bf16.mxu1 %v1889_v0  ;;  %v1479_v2 = vld [vmem:[#allocation7] ss:$16 sps:$4 sm:$0xff]   ;;  %197 = vmatprep.subr.bf16.mxu1 %v1477_v1  ;;  %v1480_v3 = vld [vmem:[#allocation7 + $0x24] ss:$16 sps:$4 sm:$0xff]   ;;  %v1485_v5 = vld [vmem:[#allocation7 + $0xc] ss:$16 sps:$4 sm:$0xff]  }
  0x94   :  { %198 = vmatpush1.bf16.msra.mxu1 %v1479_v2  ;;  %v1482_v4 = vld [vmem:[#allocation7 + $0x20] ss:$16 sps:$4 sm:$0xff]   ;;  %v144_v6 = vld [vmem:[#allocation2] sm:$0xf]  ;;  %v1483_v7 = vld [vmem:[#allocation7 + $0x8] ss:$16 sps:$4 sm:$0xff]  }
  0x95   :  { %199 = vmatprep.subr.bf16.mxu1 %v1480_v3  ;;  %v1489_v8 = vld [vmem:[#allocation8 + $0x4] ss:$8 sps:$4 sm:$0xff]   ;;  %v1491_v9 = vld [vmem:[#allocation8] ss:$8 sps:$4 sm:$0xff]   ;;  %v1492_v10 = vld [vmem:[#allocation8 + $0x14] ss:$8 sps:$4 sm:$0xff]  }
  0x96   :  { %v1488_v11 = vld [vmem:[#allocation7 + $0x2c] ss:$16 sps:$4 sm:$0xff]   ;;  %490 = vmatprep.subr.bf16.mxu0 %v1489_v8  ;;  %v1494_v12 = vld [vmem:[#allocation8 + $0x10] ss:$8 sps:$4 sm:$0xff]   ;;  %v1497_v15 = vld [vmem:[#allocation8 + $0x20] ss:$8 sps:$4 sm:$0xff]  }
  0x97   :  { %491 = vmatpush1.bf16.msra.mxu0 %v1491_v9  ;;  %v1495_v13 = vld [vmem:[#allocation8 + $0x24] ss:$8 sps:$4 sm:$0xff]   ;;  %v1486_v14 = vld [vmem:[#allocation7 + $0x28] ss:$16 sps:$4 sm:$0xff]   ;;  %v1498_v16 = vld [vmem:[#allocation8 + $0x34] ss:$8 sps:$4 sm:$0xff]  }
  0x98   :  { %200 = vmatpush1.bf16.msra.mxu1 %v1482_v4  ;;  %492 = vmatprep.subr.bf16.mxu0 %v1492_v10  ;;  %v1500_v17 = vld [vmem:[#allocation8 + $0x30] ss:$8 sps:$4 sm:$0xff]   ;;  %v1501_v18 = vld [vmem:[#allocation8 + $0x44] ss:$8 sps:$4 sm:$0xff]   ;;  %v1503_v19 = vld [vmem:[#allocation8 + $0x40] ss:$8 sps:$4 sm:$0xff]  }
  0x99   :  { %238 = vmatprep.subr.bf16.mxu1 %v1485_v5  ;;  %v1521_v20 = vld [vmem:[#allocation10 + $0x40] sm:$0xff]   ;;  %v1504_v21 = vld [vmem:[#allocation8 + $0x54] ss:$8 sps:$4 sm:$0xff]   ;;  %v1506_v23 = vld [vmem:[#allocation8 + $0x50] ss:$8 sps:$4 sm:$0xff]   ;;  %s1890_s7 = smov [#allocation17]  }
  0x9a   :  { %v1523_v22 = vld [vmem:[#allocation10] sm:$0xff]   ;;  %v1526_v24 = vld [vmem:[#allocation10 + $0x48] sm:$0xff]   ;;  %v1531_v28 = vld [vmem:[#allocation10 + $0x50] sm:$0xff]   ;;  %s1277_s10 = sshll.u32 %s1890_s7, 4  ;;  %s1278_s10 = int_to_ptr.vmem [resolvable:$true] %s1277_s10 }
  0x9b   :  { %1302 = vmatmul.mubr.msk.bf16.vlgmr.msra.gmra.mrb[0].mxu1 %vm193_vm0, %v144_v6  ;;  %493 = vmatpush1.bf16.msra.mxu0 %v1494_v12  ;;  %v1528_v25 = vld [vmem:[#allocation10 + $0x8] sm:$0xff]   ;;  %v1533_v29 = vld [vmem:[#allocation10 + $0x10] sm:$0xff]   ;;  %v1536_v31 = vld [vmem:[#allocation10 + $0x58] sm:$0xff]   ;;  %s1817_s2 = scalar_lea.vmem %s1278_s10, 128  ;;  %p1822_p9 = scmp.lt.s32.totalorder %s1278_s10, %s1278_s10 }
  0x9c   :  { %239 = vmatpush1.bf16.msra.mxu1 %v1483_v7  ;;  %270 = vmatprep.mubr.bf16.mxu1 %v1889_v0  ;;  %v1507_v26 = vld [vmem:[#allocation8 + $0x64] ss:$8 sps:$4 sm:$0xff]   ;;  %v1509_v27 = vld [vmem:[#allocation8 + $0x60] ss:$8 sps:$4 sm:$0xff]   ;;  %v1510_v30 = vld [vmem:[#allocation8 + $0x74] ss:$8 sps:$4 sm:$0xff]   ;;  %p1818_p8 = scmp.ne.s32.totalorder %s1278_s10, %s1817_s2  ;;  %p1823_p10 = scmp.lt.s32.totalorder %s1817_s2, %s1817_s2 }
  0x9d   :  { %240 = vmatprep.subr.bf16.mxu1 %v1488_v11  ;;  %494 = vmatprep.subr.bf16.mxu0 %v1495_v13  ;;  %v1512_v32 = vld [vmem:[#allocation8 + $0x70] ss:$8 sps:$4 sm:$0xff]   ;;  %v1513_v34 = vld [vmem:[#allocation8 + $0x84] ss:$8 sps:$4 sm:$0xff]   ;;  %v1515_v36 = vld [vmem:[#allocation8 + $0x80] ss:$8 sps:$4 sm:$0xff]  }
  0x9e   :  { %v1538_v33 = vld [vmem:[#allocation10 + $0x18] sm:$0xff]   ;;  %v1541_v35 = vld [vmem:[#allocation10 + $0x60] sm:$0xff]   ;;  %v1546_v51 = vld [vmem:[#allocation10 + $0x68] sm:$0xff]   ;;  %p1824_p11 = por %p1823_p10, %p1822_p9 }
  0x9f   :  { %495 = vmatpush1.bf16.msra.mxu0 %v1497_v15  ;;  %v1516_v37 = vld [vmem:[#allocation8 + $0x94] ss:$8 sps:$4 sm:$0xff]   ;;  %v1518_v38 = vld [vmem:[#allocation8 + $0x90] ss:$8 sps:$4 sm:$0xff]   ;;  %v1519_v39 = vld [vmem:[#allocation8 + $0xa4] ss:$8 sps:$4 sm:$0xff]  }
  0xa0   :  { %241 = vmatpush1.bf16.msra.mxu1 %v1486_v14  ;;  %496 = vmatprep.subr.bf16.mxu0 %v1498_v16  ;;  %v1522_v40 = vld [vmem:[#allocation8 + $0xa0] ss:$8 sps:$4 sm:$0xff]   ;;  %v1524_v41 = vld [vmem:[#allocation8 + $0xb4] ss:$8 sps:$4 sm:$0xff]   ;;  %v1527_v42 = vld [vmem:[#allocation8 + $0xb0] ss:$8 sps:$4 sm:$0xff]   ;;  %p1825_p12 = pnand %p1824_p11, %p1818_p8 }
  0xa1   :  { %1416 = vmatprep.subr.bf16.mxu1 %v1521_v20  ;;  %v1529_v43 = vld [vmem:[#allocation8 + $0xc4] ss:$8 sps:$4 sm:$0xff]   ;;  %v1532_v44 = vld [vmem:[#allocation8 + $0xc0] ss:$8 sps:$4 sm:$0xff]   ;;  %v1534_v45 = vld [vmem:[#allocation8 + $0xd4] ss:$8 sps:$4 sm:$0xff]  }
  0xa2   :  { %v1537_v46 = vld [vmem:[#allocation8 + $0xd0] ss:$8 sps:$4 sm:$0xff]   ;;  %v1539_v47 = vld [vmem:[#allocation8 + $0xe4] ss:$8 sps:$4 sm:$0xff]   ;;  %v1542_v48 = vld [vmem:[#allocation8 + $0xe0] ss:$8 sps:$4 sm:$0xff]  }
  0xa3   :  { %1303 = vmatmul.mubr.msk.bf16.vlgmr.msra.gmra.mrb[4].mxu1 %vm193_vm0, %v144_v6  ;;  %497 = vmatpush1.bf16.msra.mxu0 %v1500_v17  ;;  %v1543_v49 = vld [vmem:[#allocation10 + $0x20] sm:$0xff]   ;;  %v1544_v50 = vld [vmem:[#allocation8 + $0xf4] ss:$8 sps:$4 sm:$0xff]   ;;  %v1547_v52 = vld [vmem:[#allocation8 + $0xf0] ss:$8 sps:$4 sm:$0xff]  }
  0xa4   :  { %498 = vmatprep.subr.bf16.mxu0 %v1501_v18  ;;  %1417 = vmatpush3.bf16.msra.mxu1 %v1523_v22  ;;  %v1548_v53 = vld [vmem:[#allocation10 + $0x28] sm:$0xff]   ;;  %v1549_v54 = vld [vmem:[#allocation10 + $0x70] sm:$0xff]   ;;  %v1551_v56 = vld [vmem:[#allocation10 + $0x78] sm:$0xff]  }
  0xa5   :  { %1418 = vmatprep.subr.bf16.mxu1 %v1526_v24  ;;  %v1550_v55 = vld [vmem:[#allocation10 + $0x30] sm:$0xff]   ;;  %v1552_v57 = vld [vmem:[#allocation10 + $0x38] sm:$0xff]   ;;  %v1555_v58 = vld [vmem:[#allocation11 + $0x4] ss:$8 sps:$4 sm:$0xff]  }
  0xa6   :  { %v1585_v59 = vld [vmem:[#allocation13 + $0x4] ss:$8 sps:$4 sm:$0xff]   ;;  %v1553_v4 = vld [vmem:[#allocation11] ss:$8 sps:$4 sm:$0xff]   ;;  %v1558_v6 = vld [vmem:[#allocation11 + $0x14] ss:$8 sps:$4 sm:$0xff]  }
  0xa7   :  { %499 = vmatpush1.bf16.msra.mxu0 %v1503_v19  ;;  %v1556_v8 = vld [vmem:[#allocation11 + $0x10] ss:$8 sps:$4 sm:$0xff]   ;;  %v1561_v11 = vld [vmem:[#allocation11 + $0x24] ss:$8 sps:$4 sm:$0xff]   ;;  %v1559_v16 = vld [vmem:[#allocation11 + $0x20] ss:$8 sps:$4 sm:$0xff]  }
  0xa8   :  { %500 = vmatprep.subr.bf16.mxu0 %v1504_v21  ;;  %1419 = vmatpush3.bf16.msra.mxu1 %v1528_v25  ;;  %v1583_v17 = vld [vmem:[#allocation13] ss:$8 sps:$4 sm:$0xff]   ;;  %v1564_v19 = vld [vmem:[#allocation11 + $0x34] ss:$8 sps:$4 sm:$0xff]   ;;  %v1562_v21 = vld [vmem:[#allocation11 + $0x30] ss:$8 sps:$4 sm:$0xff]  }
  0xa9   :  { %1420 = vmatprep.subr.bf16.mxu1 %v1531_v28  ;;  %v1591_v20 = vld [vmem:[#allocation13 + $0x14] ss:$8 sps:$4 sm:$0xff]   ;;  %v1589_v22 = vld [vmem:[#allocation13 + $0x10] ss:$8 sps:$4 sm:$0xff]   ;;  %v1597_v24 = vld [vmem:[#allocation13 + $0x24] ss:$8 sps:$4 sm:$0xff]  }
  0xaa   :  { %v1565_v25 = vld [vmem:[#allocation11 + $0x40] ss:$8 sps:$4 sm:$0xff]   ;;  %v1603_v28 = vld [vmem:[#allocation13 + $0x34] ss:$8 sps:$4 sm:$0xff]  }
  0xab   :  { %501 = vmatpush1.bf16.msra.mxu0 %v1506_v23  ;;  %v1567_v23 = vld [vmem:[#allocation11 + $0x44] ss:$8 sps:$4 sm:$0xff]  }
  0xac   :  { %502 = vmatprep.subr.bf16.mxu0 %v1507_v26  ;;  %1421 = vmatpush3.bf16.msra.mxu1 %v1533_v29  ;;  %v1595_v26 = vld [vmem:[#allocation13 + $0x20] ss:$8 sps:$4 sm:$0xff]   ;;  %v1568_v29 = vld [vmem:[#allocation11 + $0x50] ss:$8 sps:$4 sm:$0xff]  }
  0xad   :  { %1422 = vmatprep.subr.bf16.mxu1 %v1536_v31  ;;  %v1573_v31 = vld [vmem:[#allocation11 + $0x64] ss:$8 sps:$4 sm:$0xff]  }
  0xaf   :  { %503 = vmatpush1.bf16.msra.mxu0 %v1509_v27  ;;  %v1570_v27 = vld [vmem:[#allocation11 + $0x54] ss:$8 sps:$4 sm:$0xff]  }
  0xb0   :  { %504 = vmatprep.subr.bf16.mxu0 %v1510_v30  ;;  %1423 = vmatpush3.bf16.msra.mxu1 %v1538_v33  ;;  %v1601_v30 = vld [vmem:[#allocation13 + $0x30] ss:$8 sps:$4 sm:$0xff]  }
  0xb1   :  { %1424 = vmatprep.subr.bf16.mxu1 %v1541_v35  ;;  %v1574_v33 = vld [vmem:[#allocation11 + $0x70] ss:$8 sps:$4 sm:$0xff]   ;;  %v1577_v35 = vld [vmem:[#allocation11 + $0x80] ss:$8 sps:$4 sm:$0xff]  }
  0xb3   :  { %505 = vmatpush1.bf16.msra.mxu0 %v1512_v32  ;;  %v1571_v32 = vld [vmem:[#allocation11 + $0x60] ss:$8 sps:$4 sm:$0xff]  }
  0xb4   :  { %506 = vmatprep.subr.bf16.mxu0 %v1513_v34  ;;  %1425 = vmatpush3.bf16.msra.mxu1 %v1543_v49  ;;  %v1579_v34 = vld [vmem:[#allocation11 + $0x84] ss:$8 sps:$4 sm:$0xff]   ;;  %v1610_v49 = vld [vmem:[#allocation11 + $0xe0] ss:$8 sps:$4 sm:$0xff]  }
  0xb5   :  { %1426 = vmatprep.subr.bf16.mxu1 %v1546_v51  ;;  %v1613_v51 = vld [vmem:[#allocation13 + $0x50] ss:$8 sps:$4 sm:$0xff]  }
  0xb7   :  { %507 = vmatpush1.bf16.msra.mxu0 %v1515_v36  ;;  %v1582_v36 = vld [vmem:[#allocation11 + $0x94] ss:$8 sps:$4 sm:$0xff]  }
  0xb8   :  { %508 = vmatprep.subr.bf16.mxu0 %v1516_v37  ;;  %1427 = vmatpush3.bf16.msra.mxu1 %v1548_v53  ;;  %v1580_v37 = vld [vmem:[#allocation11 + $0x90] ss:$8 sps:$4 sm:$0xff]  }
  0xb9   :  { %1428 = vmatprep.subr.bf16.mxu1 %v1549_v54  ;;  %v1616_v53 = vld [vmem:[#allocation11 + $0xf0] ss:$8 sps:$4 sm:$0xff]   ;;  %v1621_v54 = vld [vmem:[#allocation13 + $0x64] ss:$8 sps:$4 sm:$0xff]  }
  0xbb   :  { %509 = vmatpush1.bf16.msra.mxu0 %v1518_v38  ;;  %v1588_v38 = vld [vmem:[#allocation11 + $0xa4] ss:$8 sps:$4 sm:$0xff]  }
  0xbc   :  { %510 = vmatprep.subr.bf16.mxu0 %v1519_v39  ;;  %1429 = vmatpush3.bf16.msra.mxu1 %v1550_v55  ;;  %v1586_v39 = vld [vmem:[#allocation11 + $0xa0] ss:$8 sps:$4 sm:$0xff]  }
  0xbd   :  { %1430 = vmatprep.subr.bf16.mxu1 %v1551_v56  ;;  %v1619_v55 = vld [vmem:[#allocation13 + $0x60] ss:$8 sps:$4 sm:$0xff]   ;;  %v1624_v56 = vld [vmem:[#allocation13 + $0x74] ss:$8 sps:$4 sm:$0xff]  }
  0xbf   :  { %511 = vmatpush1.bf16.msra.mxu0 %v1522_v40  ;;  %v1594_v40 = vld [vmem:[#allocation11 + $0xb4] ss:$8 sps:$4 sm:$0xff]  }
  0xc0   :  { %512 = vmatprep.subr.bf16.mxu0 %v1524_v41  ;;  %1431 = vmatpush3.bf16.msra.mxu1 %v1552_v57  ;;  %v1592_v41 = vld [vmem:[#allocation11 + $0xb0] ss:$8 sps:$4 sm:$0xff]  }
  0xc1   :  { %833 = vmatprep.subr.bf16.mxu1 %v1585_v59  ;;  %v1622_v57 = vld [vmem:[#allocation13 + $0x70] ss:$8 sps:$4 sm:$0xff]   ;;  %v320_v59 = vlaneseq }
  0xc3   :  { %513 = vmatpush1.bf16.msra.mxu0 %v1527_v42  ;;  %v1600_v42 = vld [vmem:[#allocation11 + $0xc4] ss:$8 sps:$4 sm:$0xff]  }
  0xc4   :  { %514 = vmatprep.subr.bf16.mxu0 %v1529_v43  ;;  %v1598_v43 = vld [vmem:[#allocation11 + $0xc0] ss:$8 sps:$4 sm:$0xff]  }
  0xc7   :  { %515 = vmatpush1.bf16.msra.mxu0 %v1532_v44  ;;  %v1606_v44 = vld [vmem:[#allocation11 + $0xd4] ss:$8 sps:$4 sm:$0xff]  }
  0xc8   :  { %516 = vmatprep.subr.bf16.mxu0 %v1534_v45  ;;  %v1604_v45 = vld [vmem:[#allocation11 + $0xd0] ss:$8 sps:$4 sm:$0xff]  }
  0xcb   :  { %517 = vmatpush1.bf16.msra.mxu0 %v1537_v46  ;;  %v1609_v46 = vld [vmem:[#allocation13 + $0x44] ss:$8 sps:$4 sm:$0xff]  }
  0xcc   :  { %518 = vmatprep.subr.bf16.mxu0 %v1539_v47  ;;  %v1607_v47 = vld [vmem:[#allocation13 + $0x40] ss:$8 sps:$4 sm:$0xff]  }
  0xcf   :  { %519 = vmatpush1.bf16.msra.mxu0 %v1542_v48  ;;  %v1612_v48 = vld [vmem:[#allocation11 + $0xe4] ss:$8 sps:$4 sm:$0xff]  }
  0xd0   :  { %520 = vmatprep.subr.bf16.mxu0 %v1544_v50  ;;  %v1615_v50 = vld [vmem:[#allocation13 + $0x54] ss:$8 sps:$4 sm:$0xff]  }
  0xd3   :  { %521 = vmatpush1.bf16.msra.mxu0 %v1547_v52  ;;  %v1618_v52 = vld [vmem:[#allocation11 + $0xf4] ss:$8 sps:$4 sm:$0xff]  }
  0xd4   :  { %1034 = vmatprep.subr.bf16.mxu0 %v1555_v58  ;;  %v1625_v58 = vld [vmem:[#allocation14 + $0x40] sm:$0xff]  }
 0x16e   :  { %v231_v60 = vpop.f32.mrb[0].mxu1 }
 0x16f   :  { %v279_v61 = vmax.f32 %v231_v60, 0.0  ;;  %v233_v62 = vpop.f32.mrb[1].mxu1  ;;  %v2072_v60 = vshrl.u32 %v320_v59, 7 }
 0x170   :  { %v235_v63 = vpop.f32.mrb[2].mxu1  ;;  %v280_v1 = vmax.f32 %v233_v62, 0.0  ;;  %v139_v62 = vld [vmem:[#allocation5] ss:$8 sm:$0x3] }
 0x171   :  { %v236_v2 = vpop.f32.mrb[3].mxu1  ;;  %v283_v5 = vpack.c.bf16 %v279_v61, %v279_v61  ;;  %v322_v61 = vsub.s32 0, %v2072_v60  ;;  %v326_v63 = vsub.s32 1, %v2072_v60 }
 0x172   :  { %v284_v3 = vpack.c.bf16 %v280_v1, %v280_v1 }
 0x173   :  { %v323_v1 = vrot.slane %v139_v62, %v322_v61  ;;  %v327_v2 = vrot.slane %v139_v62, %v326_v63 }
 0x174   :  { %522 = vmatprep.mubr.bf16.mxu0 %v284_v3 }
 0x175   :  { %523 = vmatmul.mubr.bf16.vlgmr.msra.gmra.mrb[0].mxu0 %v283_v5 }
 0x176   :  { %v272_v7 = vpop.f32.mrb[4].mxu1  ;;  %1035 = vmatpush1.bf16.msra.mxu0 %v1553_v4 }
 0x177   :  { %v281_v9 = vmax.f32 %v272_v7, 0.0  ;;  %v274_v10 = vpop.f32.mrb[5].mxu1  ;;  %1036 = vmatprep.subr.bf16.mxu0 %v1558_v6 }
 0x178   :  { %v282_v12 = vmax.f32 %v274_v10, 0.0  ;;  %v276_v13 = vpop.f32.mrb[6].mxu1 }
 0x179   :  { %v277_v14 = vpop.f32.mrb[7].mxu1  ;;  %v285_v18 = vpack.c.bf16 %v281_v9, %v281_v9 }
 0x17a   :  { %v286_v15 = vpack.c.bf16 %v282_v12, %v282_v12  ;;  %1037 = vmatpush1.bf16.msra.mxu0 %v1556_v8  ;;  %v140_v14 = vld [vmem:[#allocation5 + $0x1] ss:$0 sm:$0xff] }
 0x17b   :  { %1038 = vmatprep.subr.bf16.mxu0 %v1561_v11 }
 0x17c   :  { %695 = vmatprep.mubr.bf16.mxu1 %v286_v15 }
 0x17d   :  { %696 = vmatmul.mubr.bf16.vlgmr.msra.gmra.mrb[8].mxu1 %v285_v18 }
 0x17e   :  { %1039 = vmatpush1.bf16.msra.mxu0 %v1559_v16  ;;  %834 = vmatpush1.bf16.msra.mxu1 %v1583_v17 }
 0x17f   :  { %1040 = vmatprep.subr.bf16.mxu0 %v1564_v19  ;;  %835 = vmatprep.subr.bf16.mxu1 %v1591_v20  ;;  %v1626_v20 = vld [vmem:[#allocation14] sm:$0xff]  }
 0x180   :  { %865 = vmatprep.mubr.bf16.mxu1 %v1889_v0  ;;  %v1576_v0 = vld [vmem:[#allocation11 + $0x74] ss:$8 sps:$4 sm:$0xff]  }
 0x182   :  { %1041 = vmatpush1.bf16.msra.mxu0 %v1562_v21  ;;  %836 = vmatpush1.bf16.msra.mxu1 %v1589_v22  ;;  %v1627_v22 = vld [vmem:[#allocation14 + $0x48] sm:$0xff]  }
 0x183   :  { %1042 = vmatprep.subr.bf16.mxu0 %v1567_v23  ;;  %837 = vmatprep.subr.bf16.mxu1 %v1597_v24  ;;  %v1628_v23 = vld [vmem:[#allocation14 + $0x8] sm:$0xff]   ;;  %v1629_v24 = vld [vmem:[#allocation14 + $0x50] sm:$0xff]  }
 0x186   :  { %1043 = vmatpush1.bf16.msra.mxu0 %v1565_v25  ;;  %838 = vmatpush1.bf16.msra.mxu1 %v1595_v26  ;;  %v1630_v25 = vld [vmem:[#allocation14 + $0x10] sm:$0xff]   ;;  %v1631_v26 = vld [vmem:[#allocation14 + $0x58] sm:$0xff]  }
 0x187   :  { %1044 = vmatprep.subr.bf16.mxu0 %v1570_v27  ;;  %839 = vmatprep.subr.bf16.mxu1 %v1603_v28  ;;  %v1632_v27 = vld [vmem:[#allocation14 + $0x18] sm:$0xff]   ;;  %v1633_v28 = vld [vmem:[#allocation14 + $0x60] sm:$0xff]  }
 0x18a   :  { %1045 = vmatpush1.bf16.msra.mxu0 %v1568_v29  ;;  %840 = vmatpush1.bf16.msra.mxu1 %v1601_v30  ;;  %v1634_v29 = vld [vmem:[#allocation14 + $0x20] sm:$0xff]   ;;  %v1635_v30 = vld [vmem:[#allocation14 + $0x68] sm:$0xff]  }
 0x18b   :  { %1046 = vmatprep.subr.bf16.mxu0 %v1573_v31  ;;  %841 = vmatprep.subr.bf16.mxu1 %v1609_v46  ;;  %v1636_v31 = vld [vmem:[#allocation14 + $0x28] sm:$0xff]  }
 0x18e   :  { %1047 = vmatpush1.bf16.msra.mxu0 %v1571_v32  ;;  %842 = vmatpush1.bf16.msra.mxu1 %v1607_v47  ;;  %v1637_v32 = vld [vmem:[#allocation14 + $0x70] sm:$0xff]  }
 0x18f   :  { %1048 = vmatprep.subr.bf16.mxu0 %v1576_v0  ;;  %843 = vmatprep.subr.bf16.mxu1 %v1615_v50  ;;  %v1638_v0 = vld [vmem:[#allocation14 + $0x30] sm:$0xff]  }
 0x192   :  { %1049 = vmatpush1.bf16.msra.mxu0 %v1574_v33  ;;  %844 = vmatpush1.bf16.msra.mxu1 %v1613_v51  ;;  %v1639_v33 = vld [vmem:[#allocation14 + $0x78] sm:$0xff]  }
 0x193   :  { %1050 = vmatprep.subr.bf16.mxu0 %v1579_v34  ;;  %845 = vmatprep.subr.bf16.mxu1 %v1621_v54  ;;  %v1640_v34 = vld [vmem:[#allocation14 + $0x38] sm:$0xff]  }
 0x196   :  { %1051 = vmatpush1.bf16.msra.mxu0 %v1577_v35  ;;  %846 = vmatpush1.bf16.msra.mxu1 %v1619_v55 }
 0x197   :  { %1052 = vmatprep.subr.bf16.mxu0 %v1582_v36  ;;  %847 = vmatprep.subr.bf16.mxu1 %v1624_v56 }
 0x19a   :  { %1053 = vmatpush1.bf16.msra.mxu0 %v1580_v37  ;;  %848 = vmatpush1.bf16.msra.mxu1 %v1622_v57 }
 0x19b   :  { %1054 = vmatprep.subr.bf16.mxu0 %v1588_v38  ;;  %1438 = vmatprep.subr.bf16.mxu1 %v1625_v58 }
 0x19e   :  { %1055 = vmatpush1.bf16.msra.mxu0 %v1586_v39  ;;  %v142_v39 = vld [vmem:[#allocation5 + $0x2] ss:$8 sm:$0x3] }
 0x19f   :  { %1056 = vmatprep.subr.bf16.mxu0 %v1594_v40  ;;  %v1079_v40 = vrot.slane %v142_v39, %v322_v61 }
 0x1a2   :  { %1057 = vmatpush1.bf16.msra.mxu0 %v1592_v41 }
 0x1a3   :  { %1058 = vmatprep.subr.bf16.mxu0 %v1600_v42  ;;  %v1083_v42 = vrot.slane %v142_v39, %v326_v63 }
 0x1a6   :  { %1059 = vmatpush1.bf16.msra.mxu0 %v1598_v43 }
 0x1a7   :  { %1060 = vmatprep.subr.bf16.mxu0 %v1606_v44 }
 0x1aa   :  { %1061 = vmatpush1.bf16.msra.mxu0 %v1604_v45 }
 0x1ab   :  { %1062 = vmatprep.subr.bf16.mxu0 %v1612_v48 }
 0x1ae   :  { %1063 = vmatpush1.bf16.msra.mxu0 %v1610_v49 }
 0x1af   :  { %1064 = vmatprep.subr.bf16.mxu0 %v1618_v52 }
 0x1b2   :  { %1065 = vmatpush1.bf16.msra.mxu0 %v1616_v53 }
 0x248   :  { %v524_v3 = vpop.f32.mrb[0].mxu0 }
 0x249   :  { %v525_v4 = vadd.f32 %v524_v3, %v323_v1  ;;  %v526_v5 = vpop.f32.mrb[1].mxu0 }
 0x24a   :  { %v527_v6 = vadd.f32 %v526_v5, %v327_v2  ;;  %v528_v7 = vpop.f32.mrb[2].mxu0 }
 0x24b   :  { %v531_v8 = vmax.f32 %v525_v4, 0.0  ;;  %v529_v9 = vpop.f32.mrb[3].mxu0 }
 0x24c   :  { %v532_v10 = vmax.f32 %v527_v6, 0.0 }
 0x24d   :  { %v533_v12 = vpack.c.bf16 %v531_v8, %v531_v8 }
 0x24e   :  { %v534_v11 = vpack.c.bf16 %v532_v10, %v532_v10 }
 0x250   :  { %v1432_v13 = vpop.f32.mrb[8].mxu1  ;;  %1066 = vmatprep.mubr.bf16.mxu0 %v534_v11 }
 0x251   :  { %v1433_v15 = vpop.f32.mrb[9].mxu1  ;;  %1067 = vmatmul.mubr.bf16.vlgmr.msra.gmra.mrb[4].mxu0 %v533_v12 }
 0x252   :  { %v1434_v16 = vadd.f32 %v1433_v15, %v1432_v13  ;;  %v1435_v17 = vpop.f32.mrb[10].mxu1 }
 0x253   :  { %v1436_v18 = vpop.f32.mrb[11].mxu1 }
 0x254   :  { %v698_v19 = vadd.f32 %v1434_v16, %v140_v14 }
 0x256   :  { %v704_v21 = vpack.c.bf16 %v698_v19, %v698_v19  ;;  %703 = vst [vmem:[#allocation17] sm:$0xff] %v698_v19 }
 0x258   :  { %866 = vmatmul.mubr.bf16.vlgmr.msra.gmra.mrb[12].mxu1 %v704_v21 }
 0x259   :  { %1439 = vmatpush3.bf16.msra.mxu1 %v1626_v20 }
 0x25a   :  { %1440 = vmatprep.subr.bf16.mxu1 %v1627_v22 }
 0x25d   :  { %1441 = vmatpush3.bf16.msra.mxu1 %v1628_v23 }
 0x25e   :  { %1442 = vmatprep.subr.bf16.mxu1 %v1629_v24 }
 0x261   :  { %1443 = vmatpush3.bf16.msra.mxu1 %v1630_v25 }
 0x262   :  { %1444 = vmatprep.subr.bf16.mxu1 %v1631_v26 }
 0x265   :  { %1445 = vmatpush3.bf16.msra.mxu1 %v1632_v27 }
 0x266   :  { %1446 = vmatprep.subr.bf16.mxu1 %v1633_v28 }
 0x269   :  { %1447 = vmatpush3.bf16.msra.mxu1 %v1634_v29 }
 0x26a   :  { %1448 = vmatprep.subr.bf16.mxu1 %v1635_v30 }
 0x26d   :  { %1449 = vmatpush3.bf16.msra.mxu1 %v1636_v31 }
 0x26e   :  { %1450 = vmatprep.subr.bf16.mxu1 %v1637_v32 }
 0x271   :  { %1451 = vmatpush3.bf16.msra.mxu1 %v1638_v0 }
 0x272   :  { %1452 = vmatprep.subr.bf16.mxu1 %v1639_v33 }
 0x275   :  { %1453 = vmatpush3.bf16.msra.mxu1 %v1640_v34 }
 0x324   :  { %v1068_v35 = vpop.f32.mrb[4].mxu0 }
 0x325   :  { %v1070_v36 = vpop.f32.mrb[5].mxu0 }
 0x326   :  { %v1072_v37 = vpop.f32.mrb[6].mxu0 }
 0x327   :  { %v1073_v38 = vpop.f32.mrb[7].mxu0 }
 0x32b   :  { %v867_v41 = vpop.f32.mrb[12].mxu1 }
 0x32c   :  { %v1069_v43 = vadd.f32 %v1068_v35, %v867_v41  ;;  %v869_v44 = vpop.f32.mrb[13].mxu1 }
 0x32d   :  { %v1071_v45 = vadd.f32 %v1070_v36, %v869_v44  ;;  %v871_v46 = vpop.f32.mrb[14].mxu1 }
 0x32e   :  { %v1086_v47 = vadd.f32 %v1079_v40, %v1069_v43  ;;  %v872_v48 = vpop.f32.mrb[15].mxu1 }
 0x32f   :  { %v1087_v49 = vadd.f32 %v1083_v42, %v1071_v45 }
 0x330   :  { %v1088_v50 = vmax.f32 %v1086_v47, 0.0 }
 0x331   :  { %v1089_v51 = vmax.f32 %v1087_v49, 0.0 }
 0x332   :  { %v1090_v53 = vpack.c.bf16 %v1088_v50, %v1088_v50 }
 0x333   :  { %v1091_v52 = vpack.c.bf16 %v1089_v51, %v1089_v51 }
 0x335   :  { %1252 = vmatprep.mubr.bf16.mxu1 %v1091_v52 }
 0x336   :  { %1253 = vmatmul.mubr.bf16.vlgmr.msra.gmra.mrb[16].mxu1 %v1090_v53 }
 0x337   :  { %1828 = shalt.err (!%p1825_p12)
}
 0x338   :  { %s1829_s21 = scalar_lea.hbm %s2109_s9, 128 }
 0x339   :  { %p1830_p13 = scmp.ne.s32.totalorder %s2109_s9, %s1829_s21  ;;  %p1833_p0 = scmp.lt.u32.totalorder %s1829_s21, %s2109_s9 }
 0x33b   :  { %p1835_p1 = pnand %p1833_p0, %p1830_p13 }
 0x33d   :  { %1838 = shalt.err (!%p1835_p1)
}
 0x33e   :  { %1280 = dma.vmem_to_hbm [thread:$0]  %s1278_s10, 128, %s2109_s9, [#allocation18]   ;;  %v143_v55 = vld [vmem:[#allocation5 + $0x3] ss:$0 sm:$0xff] }
 0x33f   :  { %s1891_s17 = smov [#allocation16]  }
 0x340   :  { %s1267_s25 = sshll.u32 %s1891_s17, 4  ;;  %s1268_s25 = int_to_ptr.vmem [resolvable:$true] %s1267_s25 }
 0x341   :  { %s1839_s26 = scalar_lea.vmem %s1268_s25, 128  ;;  %p1844_p3 = scmp.lt.s32.totalorder %s1268_s25, %s1268_s25 }
 0x342   :  { %p1840_p2 = scmp.ne.s32.totalorder %s1268_s25, %s1839_s26  ;;  %p1845_p4 = scmp.lt.s32.totalorder %s1839_s26, %s1839_s26 }
 0x344   :  { %p1846_p5 = por %p1845_p4, %p1844_p3 }
 0x346   :  { %p1847_p6 = pnand %p1846_p5, %p1840_p2 }
 0x409   :  { %v1454_v54 = vpop.f32.mrb[16].mxu1 }
 0x40a   :  { %v1455_v56 = vpop.f32.mrb[17].mxu1 }
 0x40b   :  { %v1456_v57 = vadd.f32 %v1455_v56, %v1454_v54  ;;  %v1457_v58 = vpop.f32.mrb[18].mxu1 }
 0x40c   :  { %v1458_v59 = vpop.f32.mrb[19].mxu1 }
 0x40d   :  { %v1255_v60 = vadd.f32 %v1456_v57, %v143_v55 }
 0x40f   :  { %1260 = vst [vmem:[#allocation16] sm:$0xff] %v1255_v60 }
 0x410   :  { %1850 = shalt.err (!%p1847_p6)
}
 0x411   :  { %s1851_s4 = scalar_lea.hbm %s2108_s8, 128 }
 0x412   :  { %p1852_p7 = scmp.ne.s32.totalorder %s2108_s8, %s1851_s4  ;;  %p1855_p8 = scmp.lt.u32.totalorder %s1851_s4, %s2108_s8 }
 0x414   :  { %p1857_p9 = pnand %p1855_p8, %p1852_p7 }
 0x416   :  { %1860 = shalt.err (!%p1857_p9)
}
 0x417   :  { %1270 = dma.vmem_to_hbm [thread:$0]  %s1268_s25, 128, %s2108_s8, [#allocation4]  }
 0x418   :  { %1871 = dma.done.wait [#allocation4], 128  }
 0x419   :  { %1872 = vsyncadd [#allocation4], 4294967168 }
 0x41a   :  { %1873 = dma.done.wait [#allocation18], 128  }
 0x41b   :  { %1874 = vsyncadd [#allocation18], 4294967168 }
 0x41c   :  { %1287 = vsyncpa [#allocation3], 1 }
 0x41d   :  { %1288 = vsyncpa [#allocation6], 1 }
 0x41e   :  { %1289 = vsyncpa [#allocation9], 1 }
 0x41f   :  { %1290 = vsyncpa [#allocation12], 1 }
 0x420   :  { %1291 = vsyncpa [#allocation15], 1 }
 0x421   :  { %1292 = vsyncpa [#allocation4], 1 }
 0x422   :  { %1293 = vsyncpa [#allocation18], 1 }

</bundles_post_ra>
